<compile_context>
chip_gen: v7x
topology: tpu7x:2x2x1
jax: 0.10.0
libtpu: 0.0.40
codegen_flags: <defaults>
</compile_context>

<pallas_src>
import functools

import jax
import jax.numpy as jnp
from jax.experimental import pallas as pl
from jax.experimental.pallas import tpu as pltpu


def _round_up(x, m):
    return ((x + m - 1) // m) * m


def _cdiv(a, b):
    return -(-a // b)


def _default_vmem_budget():
    """Tile budget for x/out/weight buffers, gated by chip VMEM capacity."""
    try:
        cap = int(pltpu.get_tpu_info().vmem_capacity_bytes)
        # v5e/v6e (128 MiB) -> 32 MiB of tiles; v7x (64 MiB) -> 16 MiB of tiles.
        return max(12 << 20, min(cap // 4, 32 << 20))
    except Exception:
        return 16 << 20


# ---------------------------------------------------------------------------
# Kernels
# ---------------------------------------------------------------------------
def _linear_kernel(x_ref, w_ref, b_ref, o_ref, *, compute_dtype):
    # x_ref: (TN, K)       streamed batch tile (in x's own dtype; cast here)
    # w_ref: (K, C_pad)    VMEM-resident pre-transposed weight
    # b_ref: (1, C_pad)    VMEM-resident f32 bias row
    # o_ref: (TN, C_pad)   lane-dense output tile
    x = x_ref[...]
    w = w_ref[...]
    if compute_dtype is not None:
        x = x.astype(compute_dtype)
        w = w.astype(compute_dtype)  # no-op when already pre-cast in prepare()
    acc = jnp.dot(x, w, preferred_element_type=jnp.float32)
    o_ref[...] = (acc + b_ref[...]).astype(o_ref.dtype)


def _linear_kernel_kacc(x_ref, w_ref, b_ref, o_ref, acc_ref, *, compute_dtype):
    # K-tiled variant: grid axis 1 is the in_ch reduction ("arbitrary").
    k = pl.program_id(1)

    @pl.when(k == 0)
    def _():
        acc_ref[...] = jnp.zeros_like(acc_ref)

    x = x_ref[...]
    w = w_ref[...]
    if compute_dtype is not None:
        x = x.astype(compute_dtype)
        w = w.astype(compute_dtype)
    acc_ref[...] += jnp.dot(x, w, preferred_element_type=jnp.float32)

    @pl.when(k == pl.num_programs(1) - 1)
    def _():
        o_ref[...] = (acc_ref[...] + b_ref[...]).astype(o_ref.dtype)


# ---------------------------------------------------------------------------
# Parameter prep (hoisted out of the forward path; cache the result)
# ---------------------------------------------------------------------------
def prepare_log_regression_params(weight, bias, *, compute_dtype=None):
    """One-time prep: optional cast, transpose to [in_ch, C], zero-pad classes
    to a multiple of 128 for lane-dense output stores."""
    num_classes, _ = weight.shape
    c_pad = _round_up(num_classes, 128)
    w = weight.astype(compute_dtype) if compute_dtype is not None else weight
    w_t = w.T                                              # [in_ch, num_classes]
    b_row = bias.astype(jnp.float32).reshape(1, num_classes)
    if c_pad != num_classes:
        w_t = jnp.pad(w_t, ((0, 0), (0, c_pad - num_classes)))
        b_row = jnp.pad(b_row, ((0, 0), (0, c_pad - num_classes)))
    return w_t, b_row


# ---------------------------------------------------------------------------
# Forward
# ---------------------------------------------------------------------------
def log_regression_forward_prepared(x, w_t, b_row, num_classes, *,
                                    compute_dtype=None, tile_n=1024, k_tile=None,
                                    vmem_budget_bytes=None,
                                    single_buffer_consts=True):
    """x: [N, in_ch]; w_t: [in_ch, C_pad] (pre-transposed, pre-padded);
    b_row: [1, C_pad] f32.  Returns [N, num_classes] in x's dtype."""
    n, in_ch = x.shape
    assert w_t.shape[0] == in_ch
    c_pad = w_t.shape[1]
    out_dtype = x.dtype

    x_bytes = jnp.dtype(x.dtype).itemsize
    w_bytes = jnp.dtype(w_t.dtype).itemsize
    o_bytes = jnp.dtype(out_dtype).itemsize

    budget = int(vmem_budget_bytes) if vmem_budget_bytes is not None else _default_vmem_budget()

    # Sublane row multiple: 8 for f32, 16 for bf16, 32 for int8/fp8 compute.
    cdt = compute_dtype if compute_dtype is not None else x.dtype
    row_mult = max(8, 32 // jnp.dtype(cdt).itemsize)

    # --- K (in_ch) tiling: only multiples of 128 that divide in_ch exactly, so the
    #     reduction never reads out-of-bounds (OOB reads are garbage, not zero). ---
    if k_tile is not None:
        tk = int(k_tile)
        if in_ch % tk != 0 or tk % 128 != 0:
            raise ValueError("k_tile must be a multiple of 128 that divides in_channels")
    else:
        tk = in_ch
        if in_ch % 128 == 0 and in_ch * c_pad * w_bytes > budget // 4:
            for cand in (2048, 1024, 512, 256, 128):
                if in_ch % cand == 0 and 2 * cand * c_pad * w_bytes <= budget // 4:
                    tk = cand
                    break
        # TODO(synk): very large in_ch that is not a multiple of 128 falls back to a
        # fully resident weight (shrinks the batch tile) instead of K-tiling.
    kb = in_ch // tk

    # --- honest VMEM budget: weight + bias + double-buffered x/out tiles + f32 acc ---
    w_bufs = 1 if (kb == 1 and single_buffer_consts) else 2
    b_bufs = 1 if single_buffer_consts else 2
    fixed = w_bufs * tk * c_pad * w_bytes + b_bufs * c_pad * 4
    per_row = 2 * tk * x_bytes + 2 * c_pad * o_bytes + (c_pad * 4 if kb > 1 else 0)
    avail = budget - fixed
    tn_budget = row_mult if avail < per_row * row_mult else avail // per_row

    tn = min(int(tile_n), int(tn_budget))
    if n >= 256:                      # guarantee >= 2 batch tiles -> both v7x TCs busy
        tn = min(tn, _round_up(_cdiv(n, 2), row_mult))
    tn = min(tn, _round_up(n, row_mult))
    tn = max(row_mult, (tn // row_mult) * row_mult)

    nb = _cdiv(n, tn)
    grid = (nb, kb)

    used = (w_bufs * tk * c_pad * w_bytes + b_bufs * c_pad * 4
            + 2 * tn * tk * x_bytes + 2 * tn * c_pad * o_bytes
            + (tn * c_pad * 4 if kb > 1 else 0))
    vmem_limit = max(16 << 20, int(used) + (8 << 20))

    cost = pl.CostEstimate(
        flops=2 * n * in_ch * c_pad,
        transcendentals=0,
        bytes_accessed=(n * in_ch * x_bytes + in_ch * c_pad * w_bytes
                        + c_pad * 4 + n * c_pad * o_bytes),
    )

    def _call(use_single_buffer):
        def const_spec(shape, imap, single):
            if single:
                return pl.BlockSpec(shape, imap, pipeline_mode=pl.Buffered(1))
            return pl.BlockSpec(shape, imap)

        w_single = use_single_buffer and kb == 1
        in_specs = [
            pl.BlockSpec((tn, tk), lambda i, k: (i, k)),                       # x tile
            const_spec((tk, c_pad), lambda i, k: (k, 0), w_single),            # weight
            const_spec((1, c_pad), lambda i, k: (0, 0), use_single_buffer),    # bias
        ]
        out_specs = pl.BlockSpec((tn, c_pad), lambda i, k: (i, 0))
        scratch = [pltpu.VMEM((tn, c_pad), jnp.float32)] if kb > 1 else []
        kern_fn = _linear_kernel_kacc if kb > 1 else _linear_kernel
        kern = functools.partial(kern_fn, compute_dtype=compute_dtype)
        return pl.pallas_call(
            kern,
            out_shape=jax.ShapeDtypeStruct((n, c_pad), out_dtype),
            grid=grid,
            in_specs=in_specs,
            out_specs=out_specs,
            scratch_shapes=scratch,
            compiler_params=pltpu.CompilerParams(
                dimension_semantics=("parallel", "arbitrary"),
                vmem_limit_bytes=int(vmem_limit),
            ),
            cost_estimate=cost,
        )(x, w_t, b_row)

    if single_buffer_consts:
        try:
            out = _call(True)
        except Exception:
            # pl.Buffered(1) rejected by this jax/Mosaic build -> default buffering.
            out = _call(False)
    else:
        out = _call(False)

    if c_pad != num_classes:
        out = out[:, :num_classes]
    return out


def log_regression_forward(x, weight, bias, *, compute_dtype=None, tile_n=1024,
                           k_tile=None, vmem_budget_bytes=None,
                           single_buffer_consts=True):
    """Forward of LogRegression: x @ weight.T + bias (PyTorch nn.Linear layout).
    Preps the params per call; for repeated calls, cache
    prepare_log_regression_params() and use log_regression_forward_prepared()."""
    w_t, b_row = prepare_log_regression_params(weight, bias, compute_dtype=compute_dtype)
    return log_regression_forward_prepared(
        x, w_t, b_row, weight.shape[0],
        compute_dtype=compute_dtype, tile_n=tile_n, k_tile=k_tile,
        vmem_budget_bytes=vmem_budget_bytes, single_buffer_consts=single_buffer_consts)


def init_log_regression_params(key, in_channels, num_classes, dtype=jnp.float32):
    """xavier_uniform_ weight [num_classes, in_channels]; PyTorch-default bias."""
    kw, kb = jax.random.split(key)
    limit_w = (6.0 / (in_channels + num_classes)) ** 0.5
    weight = jax.random.uniform(kw, (num_classes, in_channels), dtype=dtype,
                                minval=-limit_w, maxval=limit_w)
    limit_b = 1.0 / (in_channels ** 0.5)
    bias = jax.random.uniform(kb, (num_classes,), dtype=dtype,
                              minval=-limit_b, maxval=limit_b)
    return weight, bias


if __name__ == "__main__":
    key = jax.random.PRNGKey(0)
    k_x, k_p, k_x2, k_p2 = jax.random.split(key, 4)

    batch, in_channels, num_classes = 64, 32, 16
    x = jax.random.normal(k_x, (batch, in_channels), dtype=jnp.float32)
    weight, bias = init_log_regression_params(k_p, in_channels, num_classes)
    ref = x @ weight.T + bias

    # 1) f32 path (single K block, weight VMEM-resident).  Tolerance is loose
    #    because the MXU/XLA default f32-matmul pass counts may differ slightly.
    out = jax.block_until_ready(log_regression_forward(x, weight, bias))
    assert out.shape == (batch, num_classes)
    assert jnp.allclose(out, ref, atol=1e-2, rtol=1e-2)

    # 2) bf16 streamed-compute path: x stays f32 in HBM, cast in-kernel; f32 acc.
    out_bf16 = jax.block_until_ready(
        log_regression_forward(x, weight, bias, compute_dtype=jnp.bfloat16))
    assert out_bf16.shape == (batch, num_classes)
    assert jnp.allclose(out_bf16, ref, atol=6e-2, rtol=6e-2)

    # 3) K-tiled reduction path (v7x-style): in_ch=256 split into 2 K blocks with
    #    an f32 VMEM accumulator.
    in_ch2 = 256
    x2 = jax.random.normal(k_x2, (batch, in_ch2), dtype=jnp.float32)
    w2, b2 = init_log_regression_params(k_p2, in_ch2, num_classes)
    out2 = jax.block_until_ready(log_regression_forward(x2, w2, b2, k_tile=128))
    ref2 = x2 @ w2.T + b2
    assert out2.shape == (batch, num_classes)
    assert jnp.allclose(out2, ref2, atol=2e-2, rtol=2e-2)

    print("KERNEL_OK")
</pallas_src>

<mosaic_0001>
module attributes {stable_mosaic.version = 11 : i64} {
  func.func @_linear_kernel(%arg0: i32, %arg1: i32, %arg2: memref<64x32xf32, #tpu.memory_space<vmem>>, %arg3: memref<32x128xf32, #tpu.memory_space<vmem>>, %arg4: memref<1x128xf32, #tpu.memory_space<vmem>>, %arg5: memref<64x128xf32, #tpu.memory_space<vmem>>) attributes {dimension_semantics = [#tpu.dimension_semantics<parallel>, #tpu.dimension_semantics<arbitrary>], iteration_bounds = array<i64: 1, 1>, scalar_prefetch = 0 : i64, scratch_operands = 0 : i64, tpu.core_type = #tpu.core_type<tc>, window_params = [{transform_indices = @transform_0, window_bounds = array<i64: 64, 32>}, {pipeline_mode = #tpu.pipeline_mode<synchronous>, transform_indices = @transform_1, window_bounds = array<i64: 32, 128>}, {pipeline_mode = #tpu.pipeline_mode<synchronous>, transform_indices = @transform_2, window_bounds = array<i64: 1, 128>}, {transform_indices = @transform_3, window_bounds = array<i64: 64, 128>}]} {
    %c0 = arith.constant 0 : index
    %c0_0 = arith.constant 0 : index
    %0 = vector.load %arg2[%c0, %c0_0] : memref<64x32xf32, #tpu.memory_space<vmem>>, vector<64x32xf32>
    %c0_1 = arith.constant 0 : index
    %c0_2 = arith.constant 0 : index
    %1 = vector.load %arg3[%c0_1, %c0_2] : memref<32x128xf32, #tpu.memory_space<vmem>>, vector<32x128xf32>
    %cst = arith.constant dense<0.000000e+00> : vector<64x128xf32>
    %2 = tpu.matmul %0, %1, %cst {dimension_numbers = #tpu.dot_dimension_numbers<[1], [0], [0], [1], [0, 0, 1, 1], [], []>} : vector<64x32xf32>, vector<32x128xf32>, vector<64x128xf32> -> vector<64x128xf32>
    %c0_3 = arith.constant 0 : index
    %c0_4 = arith.constant 0 : index
    %3 = vector.load %arg4[%c0_3, %c0_4] : memref<1x128xf32, #tpu.memory_space<vmem>>, vector<1x128xf32>
    %4 = vector.broadcast %3 : vector<1x128xf32> to vector<64x128xf32>
    %5 = arith.addf %2, %4 : vector<64x128xf32>
    %c0_5 = arith.constant 0 : index
    %c0_6 = arith.constant 0 : index
    %6 = vector.load %arg5[%c0_5, %c0_6] : memref<64x128xf32, #tpu.memory_space<vmem>>, vector<64x128xf32>
    tpu.vector_store %arg5[%c0_5, %c0_6], %5 {strides = array<i32>} : memref<64x128xf32, #tpu.memory_space<vmem>>, vector<64x128xf32>,
    return
  }
  func.func @transform_0(%arg0: i32, %arg1: i32) -> (i32, i32) {
    %c0_i32 = arith.constant 0 : i32
    return %arg0, %arg1 : i32, i32
  }
  func.func @transform_1(%arg0: i32, %arg1: i32) -> (i32, i32) {
    %c0_i32 = arith.constant 0 : i32
    %c0_i32_0 = arith.constant 0 : i32
    return %arg1, %c0_i32 : i32, i32
  }
  func.func @transform_2(%arg0: i32, %arg1: i32) -> (i32, i32) {
    %c0_i32 = arith.constant 0 : i32
    %c0_i32_0 = arith.constant 0 : i32
    %c0_i32_1 = arith.constant 0 : i32
    return %c0_i32, %c0_i32_0 : i32, i32
  }
  func.func @transform_3(%arg0: i32, %arg1: i32) -> (i32, i32) {
    %c0_i32 = arith.constant 0 : i32
    %c0_i32_0 = arith.constant 0 : i32
    return %arg0, %c0_i32 : i32, i32
  }
}

module attributes {stable_mosaic.version = 11 : i64} {
  func.func @_linear_kernel(%arg0: i32, %arg1: i32, %arg2: memref<64x32xf32, #tpu.memory_space<vmem>>, %arg3: memref<32x128xf32, #tpu.memory_space<vmem>>, %arg4: memref<1x128xf32, #tpu.memory_space<vmem>>, %arg5: memref<64x128xf32, #tpu.memory_space<vmem>>) attributes {dimension_semantics = [#tpu.dimension_semantics<parallel>, #tpu.dimension_semantics<arbitrary>], iteration_bounds = array<i64: 1, 1>, scalar_prefetch = 0 : i64, scratch_operands = 0 : i64, tpu.core_type = #tpu.core_type<tc>, window_params = [{transform_indices = @transform_0, window_bounds = array<i64: 64, 32>}, {transform_indices = @transform_1, window_bounds = array<i64: 32, 128>}, {pipeline_mode = #tpu.pipeline_mode<synchronous>, transform_indices = @transform_2, window_bounds = array<i64: 1, 128>}, {transform_indices = @transform_3, window_bounds = array<i64: 64, 128>}]} {
    %c0 = arith.constant 0 : index
    %c0_0 = arith.constant 0 : index
    %0 = vector.load %arg2[%c0, %c0_0] : memref<64x32xf32, #tpu.memory_space<vmem>>, vector<64x32xf32>
    %c0_1 = arith.constant 0 : index
    %c0_2 = arith.constant 0 : index
    %1 = vector.load %arg3[%c0_1, %c0_2] : memref<32x128xf32, #tpu.memory_space<vmem>>, vector<32x128xf32>
    %cst = arith.constant dense<0.000000e+00> : vector<64x128xf32>
    %2 = tpu.matmul %0, %1, %cst {dimension_numbers = #tpu.dot_dimension_numbers<[1], [0], [0], [1], [0, 0, 1, 1], [], []>} : vector<64x32xf32>, vector<32x128xf32>, vector<64x128xf32> -> vector<64x128xf32>
    %c0_3 = arith.constant 0 : index
    %c0_4 = arith.constant 0 : index
    %3 = vector.load %arg4[%c0_3, %c0_4] : memref<1x128xf32, #tpu.memory_space<vmem>>, vector<1x128xf32>
    %4 = vector.broadcast %3 : vector<1x128xf32> to vector<64x128xf32>
    %5 = arith.addf %2, %4 : vector<64x128xf32>
    %c0_5 = arith.constant 0 : index
    %c0_6 = arith.constant 0 : index
    %6 = vector.load %arg5[%c0_5, %c0_6] : memref<64x128xf32, #tpu.memory_space<vmem>>, vector<64x128xf32>
    tpu.vector_store %arg5[%c0_5, %c0_6], %5 {strides = array<i32>} : memref<64x128xf32, #tpu.memory_space<vmem>>, vector<64x128xf32>,
    return
  }
  func.func @transform_0(%arg0: i32, %arg1: i32) -> (i32, i32) {
    %c0_i32 = arith.constant 0 : i32
    return %arg0, %arg1 : i32, i32
  }
  func.func @transform_1(%arg0: i32, %arg1: i32) -> (i32, i32) {
    %c0_i32 = arith.constant 0 : i32
    %c0_i32_0 = arith.constant 0 : i32
    return %arg1, %c0_i32 : i32, i32
  }
  func.func @transform_2(%arg0: i32, %arg1: i32) -> (i32, i32) {
    %c0_i32 = arith.constant 0 : i32
    %c0_i32_0 = arith.constant 0 : i32
    %c0_i32_1 = arith.constant 0 : i32
    return %c0_i32, %c0_i32_0 : i32, i32
  }
  func.func @transform_3(%arg0: i32, %arg1: i32) -> (i32, i32) {
    %c0_i32 = arith.constant 0 : i32
    %c0_i32_0 = arith.constant 0 : i32
    return %arg0, %c0_i32 : i32, i32
  }
}

</mosaic_0001>

<bundles_post_ra>
// kernel: tpu_custom_call.1
= control target key start
LH: loop header
LB: loop body
LE: loop exit
PB: predicated region body
PF: predicated region fallthrough
CT: control target
= control target key end

     0   :  { %vm34_vm0 = vcmask 261120   ;;  %s350_s0 = inlined_call_operand.vmem [shape: f32[64,32], index: 0, kind: input, shape index: {}]   ;;  %s351_s1 = inlined_call_operand.vmem [shape: f32[32,128], index: 1, kind: input, shape index: {}]   ;;  %s352_s2 = inlined_call_operand.vmem [shape: f32[1,128], index: 2, kind: input, shape index: {}]   ;;  %s353_s3 = inlined_call_operand.hbm [shape: f32[64,128], index: 3, kind: output, shape index: {}]  }
   0x1   :  { %v23_v0 = vld [vmem:[%s351_s1] sm:$0xff]  ;;  %v24_v1 = vld [vmem:[%s351_s1 + $0x8] sm:$0xff]  ;;  %v25_v2 = vld [vmem:[%s351_s1 + $0x10] sm:$0xff] }
   0x2   :  { %v229_v3 = vpack.c.bf16 %v24_v1, %v23_v0  ;;  %v26_v4 = vld [vmem:[%s351_s1 + $0x18] sm:$0xff]  ;;  %v15_v5 = vld [vmem:[%s350_s0] sm:$0xff] }
   0x3   :  { %v19_v6 = vld [vmem:[%s350_s0 + $0x20] sm:$0xff]  ;;  %v233_v7 = vpack.c.bf16 %v26_v4, %v25_v2  ;;  %217 = vmatprep.mubr.msk.f32.mxu0 %vm34_vm0, %v15_v5 }
   0x4   :  { %223 = vmatprep.mubr.msk.f32.mxu1 %vm34_vm0, %v19_v6  ;;  %230 = vmatprep.subr.bf16.mxu0 %v229_v3 }
   0x5   :  { %237 = vmatprep.subr.bf16.mxu1 %v229_v3  ;;  %232 = vmatpush3.bf16.msra.mxu0 %v229_v3 }
   0x6   :  { %239 = vmatpush3.bf16.msra.mxu1 %v229_v3 }
   0x7   :  { %8 = vsyncpa [#allocation3], 0  ;;  %234 = vmatprep.subr.bf16.mxu0 %v233_v7  ;;  %238 = vmatprep.subr.bf16.mxu1 %v233_v7  ;;  %v16_v8 = vld [vmem:[%s350_s0 + $0x8] sm:$0xff]  ;;  %v17_v10 = vld [vmem:[%s350_s0 + $0x10] sm:$0xff]  ;;  %s268_s10 = smov [#allocation2]  }
   0x8   :  { %v20_v9 = vld [vmem:[%s350_s0 + $0x28] sm:$0xff]  ;;  %v21_v11 = vld [vmem:[%s350_s0 + $0x30] sm:$0xff]  ;;  %v18_v12 = vld [vmem:[%s350_s0 + $0x18] sm:$0xff]  ;;  %s177_s11 = sshll.u32 %s268_s10, 4  ;;  %s178_s11 = int_to_ptr.vmem [resolvable:$true] %s177_s11 }
   0x9   :  { %236 = vmatpush3.bf16.msra.mxu0 %v233_v7  ;;  %v22_v13 = vld [vmem:[%s350_s0 + $0x38] sm:$0xff]  ;;  %v188_v14 = vld [vmem:[%s352_s2] ss:$0 sm:$0xff]  ;;  %s244_s0 = scalar_lea.vmem %s178_s11, 1024  ;;  %p249_p1 = scmp.lt.s32.totalorder %s178_s11, %s178_s11 }
   0xa   :  { %240 = vmatpush3.bf16.msra.mxu1 %v233_v7  ;;  %p245_p0 = scmp.ne.s32.totalorder %s178_s11, %s244_s0  ;;  %p250_p2 = scmp.lt.s32.totalorder %s244_s0, %s244_s0 }
   0xc   :  { %218 = vmatmul.mubr.msk.f32.vlgmr.msra.gmra.mrb[0].mxu0 %vm34_vm0, %v16_v8  ;;  %p251_p3 = por %p250_p2, %p249_p1 }
   0xd   :  { %224 = vmatmul.mubr.msk.f32.vlgmr.msra.gmra.mrb[0].mxu1 %vm34_vm0, %v20_v9  ;;  %220 = vmatprep.mubr.msk.f32.mxu0 %vm34_vm0, %v17_v10 }
   0xe   :  { %226 = vmatprep.mubr.msk.f32.mxu1 %vm34_vm0, %v21_v11  ;;  %p252_p4 = pnand %p251_p3, %p245_p0 }
  0x10   :  { %221 = vmatmul.mubr.msk.f32.gmra.mrb[2].mxu0 %vm34_vm0, %v18_v12 }
  0x11   :  { %227 = vmatmul.mubr.msk.f32.gmra.mrb[2].mxu1 %vm34_vm0, %v22_v13 }
  0xdf   :  { %v219_v15 = vpop.f32.mrb[0].mxu0 }
  0xe0   :  { %v225_v16 = vpop.f32.mrb[0].mxu1  ;;  %v131_v17 = vadd.f32 %v219_v15, %v188_v14  ;;  %v125_v19 = vpop.f32.mrb[1].mxu0 }
  0xe1   :  { %v151_v18 = vadd.f32 %v225_v16, %v188_v14  ;;  %v145_v20 = vpop.f32.mrb[1].mxu1  ;;  %v126_v21 = vadd.f32 %v188_v14, %v125_v19 }
  0xe2   :  { %v146_v22 = vadd.f32 %v188_v14, %v145_v20  ;;  %165 = vst [vmem:[#allocation2 + $0x8] sm:$0xff] %v131_v17 }
  0xe3   :  { %169 = vst [vmem:[#allocation2 + $0x28] sm:$0xff] %v151_v18  ;;  %164 = vst [vmem:[#allocation2] sm:$0xff] %v126_v21  ;;  %v222_v23 = vpop.f32.mrb[2].mxu0 }
  0xe4   :  { %168 = vst [vmem:[#allocation2 + $0x20] sm:$0xff] %v146_v22  ;;  %v228_v24 = vpop.f32.mrb[2].mxu1  ;;  %v141_v25 = vadd.f32 %v222_v23, %v188_v14  ;;  %v135_v27 = vpop.f32.mrb[3].mxu0 }
  0xe5   :  { %v161_v26 = vadd.f32 %v228_v24, %v188_v14  ;;  %v155_v28 = vpop.f32.mrb[3].mxu1  ;;  %v136_v29 = vadd.f32 %v188_v14, %v135_v27 }
  0xe6   :  { %v156_v30 = vadd.f32 %v188_v14, %v155_v28  ;;  %167 = vst [vmem:[#allocation2 + $0x18] sm:$0xff] %v141_v25 }
  0xe7   :  { %171 = vst [vmem:[#allocation2 + $0x38] sm:$0xff] %v161_v26  ;;  %166 = vst [vmem:[#allocation2 + $0x10] sm:$0xff] %v136_v29 }
  0xe8   :  { %170 = vst [vmem:[#allocation2 + $0x30] sm:$0xff] %v156_v30 }
  0xe9   :  { %255 = shalt.err (!%p252_p4)
}
  0xea   :  { %s256_s13 = scalar_lea.hbm %s353_s3, 1024 }
  0xeb   :  { %p257_p5 = scmp.ne.s32.totalorder %s353_s3, %s256_s13  ;;  %p260_p6 = scmp.lt.u32.totalorder %s256_s13, %s353_s3 }
  0xed   :  { %p262_p7 = pnand %p260_p6, %p257_p5 }
  0xef   :  { %265 = shalt.err (!%p262_p7)
}
  0xf0   :  { %s269_s18 = smov 128   ;;  %s270_s19 = smov 8  }
  0xf1   :  { %183 = dma.vmem_to_hbm [thread:$0]  %s178_s11, 1024, %s353_s3, [#allocation3], %s269_s18, %s269_s18, %s270_s19  }
  0xf2   :  { %266 = dma.done.wait [#allocation3], 1024  }
  0xf3   :  { %267 = vsyncadd [#allocation3], 4294966272 }
  0xf4   :  { %187 = vsyncpa [#allocation3], 1 }

// kernel: tpu_custom_call.1
= control target key start
LH: loop header
LB: loop body
LE: loop exit
PB: predicated region body
PF: predicated region fallthrough
CT: control target
= control target key end

     0   :  { %vm34_vm0 = vcmask 261120   ;;  %s350_s0 = inlined_call_operand.vmem [shape: f32[64,32], index: 0, kind: input, shape index: {}]   ;;  %s351_s1 = inlined_call_operand.vmem [shape: f32[32,128], index: 1, kind: input, shape index: {}]   ;;  %s352_s2 = inlined_call_operand.vmem [shape: f32[1,128], index: 2, kind: input, shape index: {}]   ;;  %s353_s3 = inlined_call_operand.hbm [shape: f32[64,128], index: 3, kind: output, shape index: {}]  }
   0x1   :  { %v23_v0 = vld [vmem:[%s351_s1] sm:$0xff]  ;;  %v24_v1 = vld [vmem:[%s351_s1 + $0x8] sm:$0xff]  ;;  %v25_v2 = vld [vmem:[%s351_s1 + $0x10] sm:$0xff] }
   0x2   :  { %v229_v3 = vpack.c.bf16 %v24_v1, %v23_v0  ;;  %v26_v4 = vld [vmem:[%s351_s1 + $0x18] sm:$0xff]  ;;  %v15_v5 = vld [vmem:[%s350_s0] sm:$0xff] }
   0x3   :  { %v19_v6 = vld [vmem:[%s350_s0 + $0x20] sm:$0xff]  ;;  %v233_v7 = vpack.c.bf16 %v26_v4, %v25_v2  ;;  %217 = vmatprep.mubr.msk.f32.mxu0 %vm34_vm0, %v15_v5 }
   0x4   :  { %223 = vmatprep.mubr.msk.f32.mxu1 %vm34_vm0, %v19_v6  ;;  %230 = vmatprep.subr.bf16.mxu0 %v229_v3 }
   0x5   :  { %237 = vmatprep.subr.bf16.mxu1 %v229_v3  ;;  %232 = vmatpush3.bf16.msra.mxu0 %v229_v3 }
   0x6   :  { %239 = vmatpush3.bf16.msra.mxu1 %v229_v3 }
   0x7   :  { %8 = vsyncpa [#allocation3], 0  ;;  %234 = vmatprep.subr.bf16.mxu0 %v233_v7  ;;  %238 = vmatprep.subr.bf16.mxu1 %v233_v7  ;;  %v16_v8 = vld [vmem:[%s350_s0 + $0x8] sm:$0xff]  ;;  %v17_v10 = vld [vmem:[%s350_s0 + $0x10] sm:$0xff]  ;;  %s268_s10 = smov [#allocation2]  }
   0x8   :  { %v20_v9 = vld [vmem:[%s350_s0 + $0x28] sm:$0xff]  ;;  %v21_v11 = vld [vmem:[%s350_s0 + $0x30] sm:$0xff]  ;;  %v18_v12 = vld [vmem:[%s350_s0 + $0x18] sm:$0xff]  ;;  %s177_s11 = sshll.u32 %s268_s10, 4  ;;  %s178_s11 = int_to_ptr.vmem [resolvable:$true] %s177_s11 }
   0x9   :  { %236 = vmatpush3.bf16.msra.mxu0 %v233_v7  ;;  %v22_v13 = vld [vmem:[%s350_s0 + $0x38] sm:$0xff]  ;;  %v188_v14 = vld [vmem:[%s352_s2] ss:$0 sm:$0xff]  ;;  %s244_s0 = scalar_lea.vmem %s178_s11, 1024  ;;  %p249_p1 = scmp.lt.s32.totalorder %s178_s11, %s178_s11 }
   0xa   :  { %240 = vmatpush3.bf16.msra.mxu1 %v233_v7  ;;  %p245_p0 = scmp.ne.s32.totalorder %s178_s11, %s244_s0  ;;  %p250_p2 = scmp.lt.s32.totalorder %s244_s0, %s244_s0 }
   0xc   :  { %218 = vmatmul.mubr.msk.f32.vlgmr.msra.gmra.mrb[0].mxu0 %vm34_vm0, %v16_v8  ;;  %p251_p3 = por %p250_p2, %p249_p1 }
   0xd   :  { %224 = vmatmul.mubr.msk.f32.vlgmr.msra.gmra.mrb[0].mxu1 %vm34_vm0, %v20_v9  ;;  %220 = vmatprep.mubr.msk.f32.mxu0 %vm34_vm0, %v17_v10 }
   0xe   :  { %226 = vmatprep.mubr.msk.f32.mxu1 %vm34_vm0, %v21_v11  ;;  %p252_p4 = pnand %p251_p3, %p245_p0 }
  0x10   :  { %221 = vmatmul.mubr.msk.f32.gmra.mrb[2].mxu0 %vm34_vm0, %v18_v12 }
  0x11   :  { %227 = vmatmul.mubr.msk.f32.gmra.mrb[2].mxu1 %vm34_vm0, %v22_v13 }
  0xdf   :  { %v219_v15 = vpop.f32.mrb[0].mxu0 }
  0xe0   :  { %v225_v16 = vpop.f32.mrb[0].mxu1  ;;  %v131_v17 = vadd.f32 %v219_v15, %v188_v14  ;;  %v125_v19 = vpop.f32.mrb[1].mxu0 }
  0xe1   :  { %v151_v18 = vadd.f32 %v225_v16, %v188_v14  ;;  %v145_v20 = vpop.f32.mrb[1].mxu1  ;;  %v126_v21 = vadd.f32 %v188_v14, %v125_v19 }
  0xe2   :  { %v146_v22 = vadd.f32 %v188_v14, %v145_v20  ;;  %165 = vst [vmem:[#allocation2 + $0x8] sm:$0xff] %v131_v17 }
  0xe3   :  { %169 = vst [vmem:[#allocation2 + $0x28] sm:$0xff] %v151_v18  ;;  %164 = vst [vmem:[#allocation2] sm:$0xff] %v126_v21  ;;  %v222_v23 = vpop.f32.mrb[2].mxu0 }
  0xe4   :  { %168 = vst [vmem:[#allocation2 + $0x20] sm:$0xff] %v146_v22  ;;  %v228_v24 = vpop.f32.mrb[2].mxu1  ;;  %v141_v25 = vadd.f32 %v222_v23, %v188_v14  ;;  %v135_v27 = vpop.f32.mrb[3].mxu0 }
  0xe5   :  { %v161_v26 = vadd.f32 %v228_v24, %v188_v14  ;;  %v155_v28 = vpop.f32.mrb[3].mxu1  ;;  %v136_v29 = vadd.f32 %v188_v14, %v135_v27 }
  0xe6   :  { %v156_v30 = vadd.f32 %v188_v14, %v155_v28  ;;  %167 = vst [vmem:[#allocation2 + $0x18] sm:$0xff] %v141_v25 }
  0xe7   :  { %171 = vst [vmem:[#allocation2 + $0x38] sm:$0xff] %v161_v26  ;;  %166 = vst [vmem:[#allocation2 + $0x10] sm:$0xff] %v136_v29 }
  0xe8   :  { %170 = vst [vmem:[#allocation2 + $0x30] sm:$0xff] %v156_v30 }
  0xe9   :  { %255 = shalt.err (!%p252_p4)
}
  0xea   :  { %s256_s13 = scalar_lea.hbm %s353_s3, 1024 }
  0xeb   :  { %p257_p5 = scmp.ne.s32.totalorder %s353_s3, %s256_s13  ;;  %p260_p6 = scmp.lt.u32.totalorder %s256_s13, %s353_s3 }
  0xed   :  { %p262_p7 = pnand %p260_p6, %p257_p5 }
  0xef   :  { %265 = shalt.err (!%p262_p7)
}
  0xf0   :  { %s269_s18 = smov 128   ;;  %s270_s19 = smov 8  }
  0xf1   :  { %183 = dma.vmem_to_hbm [thread:$0]  %s178_s11, 1024, %s353_s3, [#allocation3], %s269_s18, %s269_s18, %s270_s19  }
  0xf2   :  { %266 = dma.done.wait [#allocation3], 1024  }
  0xf3   :  { %267 = vsyncadd [#allocation3], 4294966272 }
  0xf4   :  { %187 = vsyncpa [#allocation3], 1 }

</bundles_post_ra>
